<compile_context>
chip_gen: v7x
topology: tpu7x:2x2x1
jax: 0.10.0
libtpu: 0.0.40
codegen_flags: <defaults>
</compile_context>

<pallas_src>
import functools

import jax
import jax.numpy as jnp
from jax.experimental import pallas as pl
from jax.experimental.pallas import tpu as pltpu

_SUBLANE_BF16 = 16           # bf16 sublane packing granularity on the M dim
_SINGLE_BLOCK_K_CAP = 8192   # up to here fc1's reduction is one K block (W1 resident)
_MULTI_BLOCK_K_TILE = 4096   # streamed K tile beyond the cap


def _round_up(x, m):
    return ((x + m - 1) // m) * m


def _cdiv(a, b):
    return (a + b - 1) // b


def _k_tiling(input_size):
    """Return (k_pad, k_tile): padded reduction length and the K tile size."""
    if input_size <= _SINGLE_BLOCK_K_CAP:
        k_pad = _round_up(input_size, 128)
        return k_pad, k_pad                      # single K block
    k_tile = _MULTI_BLOCK_K_TILE
    return _round_up(input_size, k_tile), k_tile


# --------------------------------- kernels ---------------------------------

def _mlp_kernel_fused(x_ref, w1_ref, b1_ref, w2_ref, b2_ref, o_ref):
    """Single-K-block case (common): whole fc1 reduction in one MXU call,
    hidden activation kept in registers -> no VMEM accumulator / zero-init."""
    h = jnp.dot(x_ref[...], w1_ref[...], preferred_element_type=jnp.float32)
    h = jnp.maximum(h + b1_ref[...], 0.0)                    # bias + ReLU in f32
    out = jnp.dot(h.astype(w2_ref.dtype), w2_ref[...],       # hidden -> bf16 for MXU
                  preferred_element_type=jnp.float32)
    o_ref[...] = (out + b2_ref[...]).astype(o_ref.dtype)


def _mlp_kernel_acc(x_ref, w1_ref, b1_ref, w2_ref, b2_ref, o_ref, h_acc_ref):
    """Streamed-K case (very large input_size): f32 VMEM accumulator.
    k==0 writes the first partial product (no zero-init pass), k>0 adds,
    last k runs the bias/ReLU/fc2 epilogue."""
    k = pl.program_id(1)
    partial = jnp.dot(x_ref[...], w1_ref[...], preferred_element_type=jnp.float32)

    @pl.when(k == 0)
    def _():
        h_acc_ref[...] = partial

    @pl.when(k > 0)
    def _():
        h_acc_ref[...] += partial

    @pl.when(k == pl.num_programs(1) - 1)
    def _():
        h = jnp.maximum(h_acc_ref[...] + b1_ref[...], 0.0)
        out = jnp.dot(h.astype(w2_ref.dtype), w2_ref[...],
                      preferred_element_type=jnp.float32)
        o_ref[...] = (out + b2_ref[...]).astype(o_ref.dtype)


# ------------------------------ host wrappers -------------------------------

def prepare_mlp_params(w1, b1, w2, b2):
    """One-time parameter preprocessing (call OUTSIDE the per-step jit):
      - biases reshaped to (1, n); accepts 1-D biases from a torch state_dict
      - W2/b2 class dim zero-padded to a multiple of 128 (lane-dense epilogue)
      - W1 zero-padded along the reduction dim to the kernel's K tiling
      - matmul operands cast to bf16, biases kept f32 (v5e-friendly VPU math)
    Returns (w1p, b1p, w2p, b2p, num_classes)."""
    if b1.ndim == 1:
        b1 = b1[None, :]
    if b2.ndim == 1:
        b2 = b2[None, :]
    input_size = w1.shape[0]
    num_classes = w2.shape[1]

    k_pad, _ = _k_tiling(input_size)
    if k_pad != input_size:
        w1 = jnp.pad(w1, ((0, k_pad - input_size), (0, 0)))

    c_pad = max(128, _round_up(num_classes, 128))
    if c_pad != num_classes:
        w2 = jnp.pad(w2, ((0, 0), (0, c_pad - num_classes)))
        b2 = jnp.pad(b2, ((0, 0), (0, c_pad - num_classes)))

    # TODO(synk): optional fp8 (v7x) / int8 (v6e) storage of x/W1 with f32
    # epilogue scales to halve the dominant HBM streams, if accuracy allows.
    return (w1.astype(jnp.bfloat16), b1.astype(jnp.float32),
            w2.astype(jnp.bfloat16), b2.astype(jnp.float32), num_classes)


@functools.partial(jax.jit, static_argnames=("num_classes", "batch_tile"))
def mlp_forward(x, w1p, b1p, w2p, b2p, *, num_classes, batch_tile=512):
    """x: any shape (B, ...) -> flattened to (B, input_size), like torch .view."""
    B = x.shape[0]
    x_flat = x.reshape(B, -1).astype(jnp.bfloat16)
    input_size = x_flat.shape[1]
    k_pad, k_tile = _k_tiling(input_size)
    hidden = w1p.shape[1]
    c_pad = w2p.shape[1]
    if w1p.shape[0] != k_pad:
        raise ValueError("params must come from prepare_mlp_params()")

    # Zero-pad K only when input_size is not 128-aligned; zeros contribute
    # nothing to the dot, and every x/W1 block stays bounded regardless of K.
    if input_size != k_pad:
        x_flat = jnp.pad(x_flat, ((0, 0), (0, k_pad - input_size)))

    # Batch tile: multiple of 16 (bf16 sublanes); capped so a large batch
    # yields >= 2 tiles (lets v7x shard the "parallel" axis across its 2 TCs).
    # No jnp.pad of x along batch: the last partial tile relies on Pallas
    # masked OOB reads/writes; garbage rows only affect their own rows (the
    # M dim is row-independent) and are sliced off below.
    tile_b = _round_up(max(batch_tile, _SUBLANE_BF16), _SUBLANE_BF16)
    tile_b = min(tile_b, max(_SUBLANE_BF16, _round_up(_cdiv(B, 2), _SUBLANE_BF16)))
    num_b = _cdiv(B, tile_b)
    num_k = k_pad // k_tile

    # Per-step VMEM footprint (double-buffered inputs/outputs) -> explicit
    # scoped-VMEM limit so the bigger tiles also hold on v5e's 16 MiB default
    # while staying under v7x's 64 MiB physical VMEM.
    vmem_est = (2 * tile_b * k_tile * 2            # x blocks (bf16)
                + 2 * k_tile * hidden * 2          # W1 blocks (bf16)
                + 2 * hidden * c_pad * 2           # W2 (bf16)
                + 2 * (hidden + c_pad) * 4         # biases (f32)
                + 2 * tile_b * c_pad * 2           # output blocks (bf16)
                + (tile_b * hidden * 4 if num_k > 1 else 0))
    vmem_limit = int(min(max(vmem_est * 5 // 4, 32 * 2**20), 60 * 2**20))

    out_shape = jax.ShapeDtypeStruct((B, c_pad), jnp.bfloat16)

    if num_k == 1:
        out = pl.pallas_call(
            _mlp_kernel_fused,
            out_shape=out_shape,
            grid=(num_b,),
            in_specs=[
                pl.BlockSpec((tile_b, k_tile), lambda i: (i, 0)),   # x chunk
                pl.BlockSpec((k_tile, hidden), lambda i: (0, 0)),   # W1 (resident)
                pl.BlockSpec((1, hidden), lambda i: (0, 0)),        # b1
                pl.BlockSpec((hidden, c_pad), lambda i: (0, 0)),    # W2 (padded)
                pl.BlockSpec((1, c_pad), lambda i: (0, 0)),         # b2 (padded)
            ],
            out_specs=pl.BlockSpec((tile_b, c_pad), lambda i: (i, 0)),
            compiler_params=pltpu.CompilerParams(
                dimension_semantics=("parallel",),
                vmem_limit_bytes=vmem_limit),
        )(x_flat, w1p, b1p, w2p, b2p)
    else:
        out = pl.pallas_call(
            _mlp_kernel_acc,
            out_shape=out_shape,
            grid=(num_b, num_k),
            in_specs=[
                pl.BlockSpec((tile_b, k_tile), lambda i, k: (i, k)),
                pl.BlockSpec((k_tile, hidden), lambda i, k: (k, 0)),
                pl.BlockSpec((1, hidden), lambda i, k: (0, 0)),
                pl.BlockSpec((hidden, c_pad), lambda i, k: (0, 0)),
                pl.BlockSpec((1, c_pad), lambda i, k: (0, 0)),
            ],
            out_specs=pl.BlockSpec((tile_b, c_pad), lambda i, k: (i, 0)),
            scratch_shapes=[pltpu.VMEM((tile_b, hidden), jnp.float32)],
            compiler_params=pltpu.CompilerParams(
                dimension_semantics=("parallel", "arbitrary"),
                vmem_limit_bytes=vmem_limit),
        )(x_flat, w1p, b1p, w2p, b2p)

    return out[:, :num_classes].astype(jnp.float32)


def init_mlp_params(key, input_size, num_classes=10, hidden=128):
    """Deterministic init matching torch.nn.Linear default U(-1/sqrt(fan_in))."""
    k1, k2, k3, k4 = jax.random.split(key, 4)
    bound1 = 1.0 / (input_size ** 0.5)
    bound2 = 1.0 / (hidden ** 0.5)
    w1 = jax.random.uniform(k1, (input_size, hidden), jnp.float32, -bound1, bound1)
    b1 = jax.random.uniform(k2, (hidden,), jnp.float32, -bound1, bound1)
    w2 = jax.random.uniform(k3, (hidden, num_classes), jnp.float32, -bound2, bound2)
    b2 = jax.random.uniform(k4, (num_classes,), jnp.float32, -bound2, bound2)
    return w1, b1, w2, b2


if __name__ == "__main__":
    key = jax.random.PRNGKey(0)
    k_x, k_p = jax.random.split(key)

    # Small, module-consistent shapes: batch=2, "image" of 4x16x16 -> input_size=1024.
    B, C, H, W = 2, 4, 16, 16
    input_size = C * H * W
    num_classes = 10

    x = jax.random.normal(k_x, (B, C, H, W), jnp.float32)
    w1, b1, w2, b2 = init_mlp_params(k_p, input_size, num_classes)

    # One-time preprocessing (padding + casts) hoisted out of the jitted step.
    w1p, b1p, w2p, b2p, nc = prepare_mlp_params(w1, b1, w2, b2)

    out = mlp_forward(x, w1p, b1p, w2p, b2p, num_classes=nc)
    jax.block_until_ready(out)

    # Pure-JAX fp32 reference (module semantics); tolerance covers the bf16
    # matmul operands and the bf16 output store.
    x_flat = x.reshape(B, -1)
    ref = jnp.maximum(x_flat @ w1 + b1, 0.0) @ w2 + b2
    assert out.shape == (B, num_classes)
    assert out.dtype == jnp.float32
    assert jnp.allclose(out, ref, atol=3e-2, rtol=3e-2)

    print("KERNEL_OK")
</pallas_src>

<mosaic_0001>
module attributes {stable_mosaic.version = 11 : i64} {
  func.func @_mlp_kernel_fused(%arg0: i32, %arg1: memref<16x1024xbf16, #tpu.memory_space<vmem>>, %arg2: memref<1024x128xbf16, #tpu.memory_space<vmem>>, %arg3: memref<1x128xf32, #tpu.memory_space<vmem>>, %arg4: memref<128x128xbf16, #tpu.memory_space<vmem>>, %arg5: memref<1x128xf32, #tpu.memory_space<vmem>>, %arg6: memref<16x128xbf16, #tpu.memory_space<vmem>>) attributes {dimension_semantics = [#tpu.dimension_semantics<parallel>], iteration_bounds = array<i64: 1>, scalar_prefetch = 0 : i64, scratch_operands = 0 : i64, tpu.core_type = #tpu.core_type<tc>, window_params = [{transform_indices = @transform_0, window_bounds = array<i64: 16, 1024>}, {pipeline_mode = #tpu.pipeline_mode<synchronous>, transform_indices = @transform_1, window_bounds = array<i64: 1024, 128>}, {pipeline_mode = #tpu.pipeline_mode<synchronous>, transform_indices = @transform_2, window_bounds = array<i64: 1, 128>}, {pipeline_mode = #tpu.pipeline_mode<synchronous>, transform_indices = @transform_3, window_bounds = array<i64: 128, 128>}, {pipeline_mode = #tpu.pipeline_mode<synchronous>, transform_indices = @transform_4, window_bounds = array<i64: 1, 128>}, {transform_indices = @transform_5, window_bounds = array<i64: 16, 128>}]} {
    %c0 = arith.constant 0 : index
    %c0_0 = arith.constant 0 : index
    %0 = vector.load %arg1[%c0, %c0_0] : memref<16x1024xbf16, #tpu.memory_space<vmem>>, vector<16x1024xbf16>
    %c0_1 = arith.constant 0 : index
    %c0_2 = arith.constant 0 : index
    %1 = vector.load %arg2[%c0_1, %c0_2] : memref<1024x128xbf16, #tpu.memory_space<vmem>>, vector<1024x128xbf16>
    %cst = arith.constant dense<0.000000e+00> : vector<16x128xf32>
    %2 = tpu.matmul %0, %1, %cst {dimension_numbers = #tpu.dot_dimension_numbers<[1], [0], [0], [1], [0, 0, 1, 1], [], []>} : vector<16x1024xbf16>, vector<1024x128xbf16>, vector<16x128xf32> -> vector<16x128xf32>
    %c0_3 = arith.constant 0 : index
    %c0_4 = arith.constant 0 : index
    %3 = vector.load %arg3[%c0_3, %c0_4] : memref<1x128xf32, #tpu.memory_space<vmem>>, vector<1x128xf32>
    %4 = vector.broadcast %3 : vector<1x128xf32> to vector<16x128xf32>
    %5 = arith.addf %2, %4 : vector<16x128xf32>
    %cst_5 = arith.constant 0.000000e+00 : f32
    %6 = vector.broadcast %cst_5 : f32 to vector<16x128xf32>
    %7 = arith.maximumf %5, %6 : vector<16x128xf32>
    %8 = arith.truncf %7 : vector<16x128xf32> to vector<16x128xbf16>
    %c0_6 = arith.constant 0 : index
    %c0_7 = arith.constant 0 : index
    %9 = vector.load %arg4[%c0_6, %c0_7] : memref<128x128xbf16, #tpu.memory_space<vmem>>, vector<128x128xbf16>
    %cst_8 = arith.constant dense<0.000000e+00> : vector<16x128xf32>
    %10 = tpu.matmul %8, %9, %cst_8 {dimension_numbers = #tpu.dot_dimension_numbers<[1], [0], [0], [1], [0, 0, 1, 1], [], []>} : vector<16x128xbf16>, vector<128x128xbf16>, vector<16x128xf32> -> vector<16x128xf32>
    %c0_9 = arith.constant 0 : index
    %c0_10 = arith.constant 0 : index
    %11 = vector.load %arg5[%c0_9, %c0_10] : memref<1x128xf32, #tpu.memory_space<vmem>>, vector<1x128xf32>
    %12 = vector.broadcast %11 : vector<1x128xf32> to vector<16x128xf32>
    %13 = arith.addf %10, %12 : vector<16x128xf32>
    %14 = arith.truncf %13 : vector<16x128xf32> to vector<16x128xbf16>
    %c0_11 = arith.constant 0 : index
    %c0_12 = arith.constant 0 : index
    %15 = vector.load %arg6[%c0_11, %c0_12] : memref<16x128xbf16, #tpu.memory_space<vmem>>, vector<16x128xbf16>
    tpu.vector_store %arg6[%c0_11, %c0_12], %14 {strides = array<i32>} : memref<16x128xbf16, #tpu.memory_space<vmem>>, vector<16x128xbf16>,
    return
  }
  func.func @transform_0(%arg0: i32) -> (i32, i32) {
    %c0_i32 = arith.constant 0 : i32
    %c0_i32_0 = arith.constant 0 : i32
    return %arg0, %c0_i32 : i32, i32
  }
  func.func @transform_1(%arg0: i32) -> (i32, i32) {
    %c0_i32 = arith.constant 0 : i32
    %c0_i32_0 = arith.constant 0 : i32
    %c0_i32_1 = arith.constant 0 : i32
    return %c0_i32, %c0_i32_0 : i32, i32
  }
  func.func @transform_2(%arg0: i32) -> (i32, i32) {
    %c0_i32 = arith.constant 0 : i32
    %c0_i32_0 = arith.constant 0 : i32
    %c0_i32_1 = arith.constant 0 : i32
    return %c0_i32, %c0_i32_0 : i32, i32
  }
  func.func @transform_3(%arg0: i32) -> (i32, i32) {
    %c0_i32 = arith.constant 0 : i32
    %c0_i32_0 = arith.constant 0 : i32
    %c0_i32_1 = arith.constant 0 : i32
    return %c0_i32, %c0_i32_0 : i32, i32
  }
  func.func @transform_4(%arg0: i32) -> (i32, i32) {
    %c0_i32 = arith.constant 0 : i32
    %c0_i32_0 = arith.constant 0 : i32
    %c0_i32_1 = arith.constant 0 : i32
    return %c0_i32, %c0_i32_0 : i32, i32
  }
  func.func @transform_5(%arg0: i32) -> (i32, i32) {
    %c0_i32 = arith.constant 0 : i32
    %c0_i32_0 = arith.constant 0 : i32
    return %arg0, %c0_i32 : i32, i32
  }
}

</mosaic_0001>

<bundles_post_ra>
// kernel: mlp_forward.1
= control target key start
LH: loop header
LB: loop body
LE: loop exit
PB: predicated region body
PF: predicated region fallthrough
CT: control target
= control target key end

     0   :  { %10 = vsyncpa [#allocation3], 0  ;;  %s1410_s18 = smov [#allocation2]   ;;  %s1550_s0 = inlined_call_operand.vmem [shape: bf16[2,1024], index: 0, kind: input, shape index: {}]   ;;  %s1551_s1 = inlined_call_operand.hbm [shape: bf16[1024,128], index: 1, kind: input, shape index: {}]   ;;  %s1552_s2 = inlined_call_operand.vmem [shape: f32[1,128], index: 2, kind: input, shape index: {}]   ;;  %s1553_s3 = inlined_call_operand.vmem [shape: bf16[128,128], index: 3, kind: input, shape index: {}]   ;;  %s1554_s4 = inlined_call_operand.vmem [shape: f32[1,128], index: 4, kind: input, shape index: {}]   ;;  %s1555_s5 = inlined_call_operand.vmem [shape: bf16[2,128], index: 5, kind: output, shape index: {}]  }
   0x1   :  { %s18_s19 = sshll.u32 %s1410_s18, 4  ;;  %s1386_s22 = scalar_lea.hbm %s1551_s1, 8192  ;;  %s19_s19 = int_to_ptr.vmem [resolvable:$true] %s18_s19 }
   0x2   :  { %p1387_p0 = scmp.ne.s32.totalorder %s1551_s1, %s1386_s22  ;;  %p1390_p1 = scmp.lt.u32.totalorder %s1386_s22, %s1551_s1 }
   0x4   :  { %p1392_p2 = pnand %p1390_p1, %p1387_p0 }
   0x6   :  { %1395 = shalt.err (!%p1392_p2)
}
   0x7   :  { %s1396_s27 = scalar_lea.vmem %s19_s19, 8192  ;;  %p1401_p4 = scmp.lt.s32.totalorder %s19_s19, %s19_s19 }
   0x8   :  { %p1397_p3 = scmp.ne.s32.totalorder %s19_s19, %s1396_s27  ;;  %p1402_p5 = scmp.lt.s32.totalorder %s1396_s27, %s1396_s27 }
   0xa   :  { %p1403_p6 = por %p1402_p5, %p1401_p4 }
   0xc   :  { %p1404_p7 = pnand %p1403_p6, %p1397_p3 }
   0xe   :  { %1407 = shalt.err (!%p1404_p7)
}
   0xf   :  { %s1411_s28 = smov 64   ;;  %s1412_s29 = smov 4  }
  0x10   :  { %24 = dma.hbm_to_vmem [thread:$0]  %s1551_s1, 8192, %s19_s19, [#allocation3], %s1411_s28, %s1411_s28, %s1412_s29  }
  0x11   :  { %1408 = dma.done.wait [#allocation3], 8192  }
  0x12   :  { %1409 = vsyncadd [#allocation3], 4294959104  ;;  %v1302_v0 = vld [vmem:[#allocation2 + $0x40] sm:$0xff]   ;;  %v1306_v4 = vld [vmem:[#allocation2 + $0x48] sm:$0xff]   ;;  %v1413_v25 = vmov 1966171168   ;;  %v197_v27 = vlaneseq }
  0x13   :  { %v1303_v1 = vld [vmem:[#allocation2 + $0xc0] sm:$0xff]   ;;  %1179 = vmatprep.subr.bf16.mxu0 %v1302_v0  ;;  %v1307_v5 = vld [vmem:[#allocation2 + $0xc8] sm:$0xff]   ;;  %v1310_v8 = vld [vmem:[#allocation2 + $0x50] sm:$0xff]   ;;  %v195_v26 = vunpack.c.l.s4 %v1413_v25  ;;  %vm1415_vm0 = vmmov 0  }
  0x14   :  { %v1304_v2 = vld [vmem:[#allocation2] sm:$0xff]   ;;  %1201 = vmatprep.subr.bf16.mxu1 %v1303_v1  ;;  %v1308_v6 = vld [vmem:[#allocation2 + $0x8] sm:$0xff]   ;;  %v1311_v9 = vld [vmem:[#allocation2 + $0xd0] sm:$0xff]   ;;  %v198_v33 = vshrl.u32 %v197_v27, 7 }
  0x15   :  { %v1305_v3 = vld [vmem:[#allocation2 + $0x80] sm:$0xff]   ;;  %1180 = vmatpush3.bf16.msra.mxu0 %v1304_v2  ;;  %v1309_v7 = vld [vmem:[#allocation2 + $0x88] sm:$0xff]   ;;  %v1312_v10 = vld [vmem:[#allocation2 + $0x10] sm:$0xff]   ;;  %v196_v32 = vunpack.c.0.s8 %v195_v26 }
  0x16   :  { %1202 = vmatpush3.bf16.msra.mxu1 %v1305_v3  ;;  %1181 = vmatprep.subr.bf16.mxu0 %v1306_v4  ;;  %v1313_v11 = vld [vmem:[#allocation2 + $0x90] sm:$0xff]   ;;  %v1314_v12 = vld [vmem:[#allocation2 + $0x58] sm:$0xff]   ;;  %v1318_v16 = vld [vmem:[#allocation2 + $0x60] sm:$0xff]  }
  0x17   :  { %1203 = vmatprep.subr.bf16.mxu1 %v1307_v5  ;;  %v1315_v13 = vld [vmem:[#allocation2 + $0xd8] sm:$0xff]   ;;  %v1319_v17 = vld [vmem:[#allocation2 + $0xe0] sm:$0xff]   ;;  %v1322_v20 = vld [vmem:[#allocation2 + $0x68] sm:$0xff]   ;;  %v1458_v37 = vsub.s32 %v196_v32, %v198_v33 }
  0x18   :  { %v1316_v14 = vld [vmem:[#allocation2 + $0x18] sm:$0xff]   ;;  %v1320_v18 = vld [vmem:[#allocation2 + $0x20] sm:$0xff]   ;;  %v1323_v21 = vld [vmem:[#allocation2 + $0xe8] sm:$0xff]  }
  0x19   :  { %1182 = vmatpush3.bf16.msra.mxu0 %v1308_v6  ;;  %v1317_v15 = vld [vmem:[#allocation2 + $0x98] sm:$0xff]   ;;  %v1321_v19 = vld [vmem:[#allocation2 + $0xa0] sm:$0xff]   ;;  %v1324_v22 = vld [vmem:[#allocation2 + $0x28] sm:$0xff]  }
  0x1a   :  { %1204 = vmatpush3.bf16.msra.mxu1 %v1309_v7  ;;  %1183 = vmatprep.subr.bf16.mxu0 %v1310_v8  ;;  %v1325_v23 = vld [vmem:[#allocation2 + $0xa8] sm:$0xff]   ;;  %v1326_v24 = vld [vmem:[#allocation2 + $0x70] sm:$0xff]   ;;  %v1330_v31 = vld [vmem:[#allocation2 + $0x78] sm:$0xff]  }
  0x1b   :  { %1205 = vmatprep.subr.bf16.mxu1 %v1311_v9  ;;  %v1327_v28 = vld [vmem:[#allocation2 + $0xf0] sm:$0xff]   ;;  %v1331_v34 = vld [vmem:[#allocation2 + $0xf8] sm:$0xff]   ;;  %v1334_v38 = vld [vmem:[%s1550_s0] ss:$8 sps:$4 sm:$0xff]  }
  0x1c   :  { %v1328_v29 = vld [vmem:[#allocation2 + $0x30] sm:$0xff]   ;;  %v1332_v35 = vld [vmem:[#allocation2 + $0x38] sm:$0xff]   ;;  %v1336_v39 = vld [vmem:[%s1550_s0 + $0x4] ss:$8 sps:$4 sm:$0xff]   ;;  %v200_v45 = vrot.slane %v1334_v38, %v1458_v37 }
  0x1d   :  { %1184 = vmatpush3.bf16.msra.mxu0 %v1312_v10  ;;  %v1329_v30 = vld [vmem:[#allocation2 + $0xb0] sm:$0xff]   ;;  %v1333_v36 = vld [vmem:[#allocation2 + $0xb8] sm:$0xff]   ;;  %v1340_v42 = vld [vmem:[%s1550_s0 + $0x20] ss:$8 sps:$4 sm:$0xff]   ;;  %v1487_v48 = vrot.slane %v1336_v39, %v1458_v37 }
  0x1e   :  { %1206 = vmatpush3.bf16.msra.mxu1 %v1313_v11  ;;  %1185 = vmatprep.subr.bf16.mxu0 %v1314_v12  ;;  %v1337_v40 = vld [vmem:[%s1550_s0 + $0x10] ss:$8 sps:$4 sm:$0xff]   ;;  %v1339_v41 = vld [vmem:[%s1550_s0 + $0x14] ss:$8 sps:$4 sm:$0xff]   ;;  %v1342_v43 = vld [vmem:[%s1550_s0 + $0x24] ss:$8 sps:$4 sm:$0xff]   ;;  %v228_v50 = vrot.slane %v1340_v42, %v1458_v37 }
  0x1f   :  { %1207 = vmatprep.subr.bf16.mxu1 %v1315_v13  ;;  %v1343_v44 = vld [vmem:[%s1550_s0 + $0x30] ss:$8 sps:$4 sm:$0xff]   ;;  %v1345_v46 = vld [vmem:[%s1550_s0 + $0x34] ss:$8 sps:$4 sm:$0xff]   ;;  %v214_v47 = vrot.slane %v1337_v40, %v1458_v37  ;;  %v1490_v49 = vrot.slane %v1339_v41, %v1458_v37  ;;  %v1346_v52 = vld [vmem:[#allocation2 + $0x140] sm:$0xff]   ;;  %v1495_v53 = vrot.slane %v1342_v43, %v1458_v37 }
  0x20   :  { %v242_v51 = vrot.slane %v1343_v44, %v1458_v37  ;;  %v1347_v56 = vld [vmem:[#allocation2 + $0x1c0] sm:$0xff]   ;;  %v1498_v57 = vrot.slane %v1345_v46, %v1458_v37  ;;  %v1350_v10 = vld [vmem:[#allocation2 + $0x148] sm:$0xff]   ;;  %v1370_v32 = vld [vmem:[#allocation2 + $0x170] sm:$0xff]  }
  0x21   :  { %1186 = vmatpush3.bf16.msra.mxu0 %v1316_v14  ;;  %v251_v54 = vcombine.high %v200_v45, %v214_v47  ;;  %v250_v55 = vcombine.low %v200_v45, %v214_v47  ;;  %v253_v58 = vcombine.high %v1487_v48, %v1490_v49  ;;  %v1348_v2 = vld [vmem:[#allocation2 + $0x100] sm:$0xff]   ;;  %v1351_v11 = vld [vmem:[#allocation2 + $0x1c8] sm:$0xff]   ;;  %v1371_v33 = vld [vmem:[#allocation2 + $0x1f0] sm:$0xff]  }
  0x22   :  { %1208 = vmatpush3.bf16.msra.mxu1 %v1317_v15  ;;  %1187 = vmatprep.subr.bf16.mxu0 %v1318_v16  ;;  %v255_v59 = vcombine.high %v228_v50, %v242_v51  ;;  %v254_v60 = vcombine.low %v228_v50, %v242_v51  ;;  %v257_v63 = vcombine.high %v1495_v53, %v1498_v57  ;;  %v1349_v4 = vld [vmem:[#allocation2 + $0x180] sm:$0xff]   ;;  %v1352_v12 = vld [vmem:[#allocation2 + $0x108] sm:$0xff]   ;;  %v1354_v16 = vld [vmem:[#allocation2 + $0x150] sm:$0xff]  }
  0x23   :  { %1209 = vmatprep.subr.bf16.mxu1 %v1319_v17  ;;  %v278_v61 = vrot.slane %v251_v54, %v1458_v37  ;;  %v264_v62 = vrot.slane %v250_v55, %v1458_v37  ;;  %v285_v3 = vrot.slane %v253_v58, %v1458_v37  ;;  %v1353_v15 = vld [vmem:[#allocation2 + $0x188] sm:$0xff]   ;;  %v1355_v17 = vld [vmem:[#allocation2 + $0x1d0] sm:$0xff]   ;;  %v1363_v25 = vld [vmem:[#allocation2 + $0x1e0] sm:$0xff]   ;;  %v256_v38 = vcombine.low %v1495_v53, %v1498_v57 }
  0x24   :  { %v306_v0 = vrot.slane %v255_v59, %v1458_v37  ;;  %v292_v1 = vrot.slane %v254_v60, %v1458_v37  ;;  %v313_v5 = vrot.slane %v257_v63, %v1458_v37  ;;  %v1364_v26 = vld [vmem:[#allocation2 + $0x120] sm:$0xff]   ;;  %v1374_v39 = vld [vmem:[#allocation2 + $0x178] sm:$0xff]   ;;  %v1380_v50 = vld [vmem:[%s1553_s3 + $0x10] sm:$0xff]  }
  0x25   :  { %1188 = vmatpush3.bf16.msra.mxu0 %v1320_v18  ;;  %v1356_v18 = vld [vmem:[#allocation2 + $0x110] sm:$0xff]   ;;  %v1365_v27 = vld [vmem:[#allocation2 + $0x1a0] sm:$0xff]   ;;  %v1375_v40 = vld [vmem:[#allocation2 + $0x1f8] sm:$0xff]   ;;  %v299_v44 = vrot.slane %v256_v38, %v1458_v37 }
  0x26   :  { %1210 = vmatpush3.bf16.msra.mxu1 %v1321_v19  ;;  %1189 = vmatprep.subr.bf16.mxu0 %v1322_v20  ;;  %v318_v6 = vcombine.low %v278_v61, %v306_v0  ;;  %v319_v7 = vcombine.high %v278_v61, %v306_v0  ;;  %v314_v8 = vcombine.low %v264_v62, %v292_v1  ;;  %v1357_v19 = vld [vmem:[#allocation2 + $0x190] sm:$0xff]   ;;  %v1358_v20 = vld [vmem:[#allocation2 + $0x158] sm:$0xff]   ;;  %v1378_v47 = vld [vmem:[%s1553_s3] sm:$0xff]  }
  0x27   :  { %1211 = vmatprep.subr.bf16.mxu1 %v1323_v21  ;;  %v315_v9 = vcombine.high %v264_v62, %v292_v1  ;;  %v320_v13 = vcombine.low %v285_v3, %v313_v5  ;;  %v321_v14 = vcombine.high %v285_v3, %v313_v5  ;;  %v1359_v21 = vld [vmem:[#allocation2 + $0x1d8] sm:$0xff]   ;;  %v1383_v53 = vld [vmem:[%s1553_s3 + $0x28] sm:$0xff]   ;;  %v1384_v54 = vld [vmem:[%s1553_s3 + $0x30] sm:$0xff]  }
  0x28   :  { %746 = vmatprep.mubr.bf16.mxu0 %v318_v6  ;;  %787 = vmatprep.mubr.bf16.mxu1 %v319_v7  ;;  %v1376_v41 = vld [vmem:[#allocation2 + $0x138] sm:$0xff]   ;;  %v1100_v58 = vld [vmem:[%s1552_s2] ss:$0 sm:$0xff] }
  0x29   :  { %1190 = vmatpush3.bf16.msra.mxu0 %v1324_v22  ;;  %v1360_v22 = vld [vmem:[#allocation2 + $0x118] sm:$0xff]  }
  0x2a   :  { %1212 = vmatpush3.bf16.msra.mxu1 %v1325_v23  ;;  %1191 = vmatprep.subr.bf16.mxu0 %v1326_v24  ;;  %v1361_v23 = vld [vmem:[#allocation2 + $0x198] sm:$0xff]   ;;  %v1362_v24 = vld [vmem:[#allocation2 + $0x160] sm:$0xff]  }
  0x2b   :  { %1213 = vmatprep.subr.bf16.mxu1 %v1327_v28  ;;  %v1366_v28 = vld [vmem:[#allocation2 + $0x168] sm:$0xff]   ;;  %v1377_v42 = vld [vmem:[#allocation2 + $0x1b8] sm:$0xff]  }
  0x2c   :  { %v1381_v51 = vld [vmem:[%s1553_s3 + $0x18] sm:$0xff]  }
  0x2d   :  { %1192 = vmatpush3.bf16.msra.mxu0 %v1328_v29  ;;  %v1367_v29 = vld [vmem:[#allocation2 + $0x1e8] sm:$0xff]   ;;  %v1385_v55 = vld [vmem:[%s1553_s3 + $0x38] sm:$0xff]  }
  0x2e   :  { %1214 = vmatpush3.bf16.msra.mxu1 %v1329_v30  ;;  %1193 = vmatprep.subr.bf16.mxu0 %v1330_v31  ;;  %v1368_v30 = vld [vmem:[#allocation2 + $0x128] sm:$0xff]  }
  0x2f   :  { %1215 = vmatprep.subr.bf16.mxu1 %v1331_v34  ;;  %v1369_v31 = vld [vmem:[#allocation2 + $0x1a8] sm:$0xff]   ;;  %v1372_v34 = vld [vmem:[#allocation2 + $0x130] sm:$0xff]  }
  0x31   :  { %1194 = vmatpush3.bf16.msra.mxu0 %v1332_v35  ;;  %v1373_v35 = vld [vmem:[#allocation2 + $0x1b0] sm:$0xff]  }
  0x32   :  { %1216 = vmatpush3.bf16.msra.mxu1 %v1333_v36  ;;  %1223 = vmatprep.subr.bf16.mxu0 %v1346_v52  ;;  %v252_v36 = vcombine.low %v1487_v48, %v1490_v49  ;;  %v1414_v48 = vmov 0.0   ;;  %v1379_v49 = vld [vmem:[%s1553_s3 + $0x8] sm:$0xff]   ;;  %v1382_v52 = vld [vmem:[%s1553_s3 + $0x20] sm:$0xff]  }
  0x33   :  { %1245 = vmatprep.subr.bf16.mxu1 %v1347_v56 }
  0x34   :  { %747 = vmatmul.mubr.bf16.vlgmr.msra.gmra.mrb[0].mxu0 %v314_v8  ;;  %v271_v43 = vrot.slane %v252_v36, %v1458_v37 }
  0x35   :  { %788 = vmatmul.mubr.bf16.vlgmr.msra.gmra.mrb[0].mxu1 %v315_v9  ;;  %1224 = vmatpush3.bf16.msra.mxu0 %v1348_v2 }
  0x36   :  { %1246 = vmatpush3.bf16.msra.mxu1 %v1349_v4  ;;  %1225 = vmatprep.subr.bf16.mxu0 %v1350_v10  ;;  %v316_v45 = vcombine.low %v271_v43, %v299_v44  ;;  %v317_v46 = vcombine.high %v271_v43, %v299_v44 }
  0x37   :  { %1247 = vmatprep.subr.bf16.mxu1 %v1351_v11  ;;  %828 = vmatprep.mubr.bf16.mxu0 %v320_v13 }
  0x38   :  { %869 = vmatprep.mubr.bf16.mxu1 %v321_v14 }
  0x39   :  { %1226 = vmatpush3.bf16.msra.mxu0 %v1352_v12 }
  0x3a   :  { %1248 = vmatpush3.bf16.msra.mxu1 %v1353_v15  ;;  %1227 = vmatprep.subr.bf16.mxu0 %v1354_v16 }
  0x3b   :  { %1249 = vmatprep.subr.bf16.mxu1 %v1355_v17 }
  0x3d   :  { %1228 = vmatpush3.bf16.msra.mxu0 %v1356_v18 }
  0x3e   :  { %1250 = vmatpush3.bf16.msra.mxu1 %v1357_v19  ;;  %1229 = vmatprep.subr.bf16.mxu0 %v1358_v20 }
  0x3f   :  { %1251 = vmatprep.subr.bf16.mxu1 %v1359_v21 }
  0x41   :  { %1230 = vmatpush3.bf16.msra.mxu0 %v1360_v22 }
  0x42   :  { %1252 = vmatpush3.bf16.msra.mxu1 %v1361_v23  ;;  %1231 = vmatprep.subr.bf16.mxu0 %v1362_v24 }
  0x43   :  { %1253 = vmatprep.subr.bf16.mxu1 %v1363_v25 }
  0x45   :  { %1232 = vmatpush3.bf16.msra.mxu0 %v1364_v26 }
  0x46   :  { %1254 = vmatpush3.bf16.msra.mxu1 %v1365_v27  ;;  %1233 = vmatprep.subr.bf16.mxu0 %v1366_v28  ;;  %v1165_v28 = vld [vmem:[%s1554_s4] ss:$0 sm:$0xff] }
  0x47   :  { %1255 = vmatprep.subr.bf16.mxu1 %v1367_v29 }
  0x49   :  { %1234 = vmatpush3.bf16.msra.mxu0 %v1368_v30 }
  0x4a   :  { %1256 = vmatpush3.bf16.msra.mxu1 %v1369_v31  ;;  %1235 = vmatprep.subr.bf16.mxu0 %v1370_v32 }
  0x4b   :  { %1257 = vmatprep.subr.bf16.mxu1 %v1371_v33 }
  0x4d   :  { %1236 = vmatpush3.bf16.msra.mxu0 %v1372_v34 }
  0x4e   :  { %1258 = vmatpush3.bf16.msra.mxu1 %v1373_v35  ;;  %1237 = vmatprep.subr.bf16.mxu0 %v1374_v39 }
  0x4f   :  { %1259 = vmatprep.subr.bf16.mxu1 %v1375_v40 }
  0x51   :  { %1238 = vmatpush3.bf16.msra.mxu0 %v1376_v41 }
  0x52   :  { %1260 = vmatpush3.bf16.msra.mxu1 %v1377_v42  ;;  %1276 = vmatprep.subr.bf16.mxu0 %v1414_v48 }
  0x54   :  { %829 = vmatmul.mubr.bf16.vlgmr.msra.gmra.mrb[4].mxu0 %v316_v45 }
  0x55   :  { %870 = vmatmul.mubr.bf16.vlgmr.msra.gmra.mrb[4].mxu1 %v317_v46  ;;  %1277 = vmatpush3.bf16.msra.mxu0 %v1378_v47 }
  0x56   :  { %1278 = vmatprep.subr.bf16.mxu0 %v1414_v48  ;;  %1292 = vmatprep.mubr.msk.bf16.mxu0 %vm1415_vm0, %v1414_v48 }
  0x59   :  { %1279 = vmatpush3.bf16.msra.mxu0 %v1379_v49 }
  0x5a   :  { %1280 = vmatprep.subr.bf16.mxu0 %v1414_v48 }
  0x5d   :  { %1281 = vmatpush3.bf16.msra.mxu0 %v1380_v50 }
  0x5e   :  { %1282 = vmatprep.subr.bf16.mxu0 %v1414_v48 }
  0x61   :  { %1283 = vmatpush3.bf16.msra.mxu0 %v1381_v51 }
  0x62   :  { %1284 = vmatprep.subr.bf16.mxu0 %v1414_v48 }
  0x65   :  { %1285 = vmatpush3.bf16.msra.mxu0 %v1382_v52 }
  0x66   :  { %1286 = vmatprep.subr.bf16.mxu0 %v1414_v48 }
  0x69   :  { %1287 = vmatpush3.bf16.msra.mxu0 %v1383_v53 }
  0x6a   :  { %1288 = vmatprep.subr.bf16.mxu0 %v1414_v48 }
  0x6d   :  { %1289 = vmatpush3.bf16.msra.mxu0 %v1384_v54 }
  0x6e   :  { %1290 = vmatprep.subr.bf16.mxu0 %v1414_v48 }
  0x71   :  { %1291 = vmatpush3.bf16.msra.mxu0 %v1385_v55 }
 0x107   :  { %v1195_v56 = vpop.f32.mrb[0].mxu0 }
 0x108   :  { %v1217_v57 = vpop.f32.mrb[0].mxu1  ;;  %v1196_v59 = vpop.f32.mrb[1].mxu0 }
 0x109   :  { %v1218_v60 = vpop.f32.mrb[1].mxu1  ;;  %v1197_v61 = vadd.f32 %v1196_v59, %v1195_v56  ;;  %v1198_v63 = vpop.f32.mrb[2].mxu0 }
 0x10a   :  { %v1219_v62 = vadd.f32 %v1218_v60, %v1217_v57  ;;  %v1220_v0 = vpop.f32.mrb[2].mxu1  ;;  %v1199_v1 = vpop.f32.mrb[3].mxu0 }
 0x10b   :  { %v1221_v2 = vpop.f32.mrb[3].mxu1  ;;  %v749_v3 = vadd.f32 %v1197_v61, %v1100_v58  ;;  %v1200_v4 = vadd.f32 %v1199_v1, %v1198_v63 }
 0x10c   :  { %v1222_v5 = vadd.f32 %v1221_v2, %v1220_v0 }
 0x10d   :  { %v790_v6 = vadd.f32 %v1219_v62, %v749_v3  ;;  %v752_v7 = vadd.f32 %v1200_v4, %v1100_v58 }
 0x10f   :  { %v793_v8 = vadd.f32 %v1222_v5, %v752_v7 }
 0x127   :  { %v1239_v9 = vpop.f32.mrb[4].mxu0 }
 0x128   :  { %v1261_v10 = vpop.f32.mrb[4].mxu1  ;;  %v1240_v11 = vpop.f32.mrb[5].mxu0 }
 0x129   :  { %v1262_v12 = vpop.f32.mrb[5].mxu1  ;;  %v1241_v13 = vadd.f32 %v1240_v11, %v1239_v9  ;;  %v1242_v15 = vpop.f32.mrb[6].mxu0 }
 0x12a   :  { %v1263_v14 = vadd.f32 %v1262_v12, %v1261_v10  ;;  %v1264_v16 = vpop.f32.mrb[6].mxu1  ;;  %v1243_v17 = vpop.f32.mrb[7].mxu0 }
 0x12b   :  { %v1265_v18 = vpop.f32.mrb[7].mxu1  ;;  %v831_v19 = vadd.f32 %v1241_v13, %v790_v6  ;;  %v1244_v20 = vadd.f32 %v1243_v17, %v1242_v15 }
 0x12c   :  { %v1266_v21 = vadd.f32 %v1265_v18, %v1264_v16 }
 0x12d   :  { %v872_v22 = vadd.f32 %v1263_v14, %v831_v19  ;;  %v834_v23 = vadd.f32 %v1244_v20, %v793_v8 }
 0x12f   :  { %v875_v24 = vadd.f32 %v1266_v21, %v834_v23  ;;  %v878_v25 = vmax.f32 %v872_v22, 0.0 }
 0x131   :  { %v879_v26 = vmax.f32 %v875_v24, 0.0 }
 0x133   :  { %v880_v27 = vpack.c.bf16 %v879_v26, %v878_v25 }
 0x135   :  { %1293 = vmatmul.mubr.bf16.vlgmr.msra.gmra.mrb[8].mxu0 %v880_v27 }
 0x208   :  { %v986_v29 = vpop.f32.mrb[8].mxu0 }
 0x209   :  { %v1294_v30 = vpop.f32.mrb[9].mxu0  ;;  %v987_v32 = vadd.f32 %v1165_v28, %v986_v29 }
 0x20a   :  { %v989_v31 = vpop.f32.mrb[10].mxu0 }
 0x20b   :  { %v990_v33 = vadd.f32 %v1165_v28, %v989_v31  ;;  %v1295_v34 = vpop.f32.mrb[11].mxu0 }
 0x20d   :  { %v993_v35 = vpack.c.bf16 %v990_v33, %v987_v32 }
 0x20f   :  { %v1002_v36 = vrot.slane %v993_v35, %v1458_v37 }
 0x211   :  { %1175 = vst.sshfl [vmem:[#allocation4] sm:$0x1 pattern:$0x73625140] %v1002_v36 }
 0x218   :  { %v1077_v38 = vld [vmem:[#allocation4] sm:$0x1] }
 0x219   :  { %1078 = vst [vmem:[%s1555_s5] sm:$0x1] %v1077_v38 }
 0x21a   :  { %1095 = vsyncpa [#allocation3], 1 }

</bundles_post_ra>
